<compile_context>
chip_gen: v7x
topology: tpu7x:2x2x1
jax: 0.10.0
libtpu: 0.0.40
codegen_flags: <defaults>
</compile_context>

<pallas_src>
import functools
import math

import jax
import jax.numpy as jnp
from jax import lax
from jax.experimental import pallas as pl
from jax.experimental.pallas import tpu as pltpu


def _round_up(v, m):
    return ((v + m - 1) // m) * m


def _gelu(h, approximate):
    if approximate:
        c = math.sqrt(2.0 / math.pi)
        return 0.5 * h * (1.0 + jnp.tanh(c * (h + 0.044715 * (h * h * h))))
    return 0.5 * h * (1.0 + lax.erf(h * (1.0 / math.sqrt(2.0))))


def _mlp_kernel(x_ref, w1_ref, b1_ref, w2_ref, b2_ref, o_ref, acc_ref, *,
                compute_dtype, ew_dtype, approximate):
    """One (row-tile, hidden-tile) step of GELU(x @ W1 + b1) @ W2 + b2."""
    k = pl.program_id(1)

    @pl.when(k == 0)
    def _():
        acc_ref[...] = jnp.zeros_like(acc_ref)

    x = x_ref[...].astype(compute_dtype)
    # c_fc on the MXU, f32 accumulation; f32 bias add.
    h = jnp.dot(x, w1_ref[...], preferred_element_type=jnp.float32)
    h = (h + b1_ref[...]).astype(ew_dtype)
    # tanh-approx GELU (EUP); the exact-erf parity path stays in f32 on the VPU.
    h = _gelu(h, approximate)
    # c_proj on the MXU, accumulated in f32 across hidden tiles.
    acc_ref[...] += jnp.dot(h.astype(compute_dtype), w2_ref[...],
                            preferred_element_type=jnp.float32)

    @pl.when(k == pl.num_programs(1) - 1)
    def _():
        o_ref[...] = (acc_ref[...] + b2_ref[...]).astype(o_ref.dtype)


def _vmem_capacity_bytes():
    """Per-TensorCore VMEM capacity (each TC holds its own weight copy)."""
    try:
        cap = getattr(pltpu.get_tpu_info(), "vmem_capacity_bytes", None)
        if cap:
            return int(cap)
    except Exception:
        pass
    try:
        kind = jax.devices()[0].device_kind.lower()
    except Exception:
        kind = ""
    if "v7" in kind:
        return 64 << 20                    # v7x: 64 MiB per TC
    if any(t in kind for t in ("v4", "v5", "v6")):
        return 128 << 20                   # v4/v5e/v5p/v6e: 128 MiB
    return 64 << 20                        # unknown: be conservative


def _default_elementwise_dtype(compute_dtype):
    """bf16 GELU/bias region only where the VPU/EUP have a bf16 path (v6e/v7x)."""
    if jnp.dtype(compute_dtype) != jnp.dtype(jnp.bfloat16):
        return jnp.float32
    try:
        kind = jax.devices()[0].device_kind.lower()
    except Exception:
        return jnp.float32
    if any(t in kind for t in ("v2", "v3", "v4", "v5")):
        return jnp.float32
    return jnp.bfloat16


def _choose_block_h(h_pad, d_new, cbytes, capacity, block_h):
    """Largest multiple-of-128 divisor of h_pad that keeps weight tiles in budget."""
    if block_h is None:
        budget = int(0.35 * capacity)
        if 2 * d_new * h_pad * cbytes <= budget:
            return h_pad                   # fully resident, single hidden tile
        target = budget // max(1, 4 * d_new * cbytes)   # 2 weights x 2 buffers
    else:
        target = int(block_h)
    target = max(128, target)
    best, t = 128, 128
    while t <= min(h_pad, target):
        if h_pad % t == 0:
            best = t
        t += 128
    return best


def from_torch_layout(w_fc, b_fc, w_proj, b_proj):
    """One-time conversion of torch nn.Linear weights ((out,in)) to (in,out)."""
    return w_fc.T, b_fc, w_proj.T, b_proj


def prepare_params(w_fc, b_fc, w_proj, b_proj, *, compute_dtype=jnp.bfloat16):
    """One-time param prep (do OUTSIDE the hot path): pad hidden to a multiple of
    128, cast weights to the matmul dtype, biases to f32. Zero padding is exact
    through Linear -> GELU -> Linear (GELU(0)=0, zero W2 rows contribute nothing)."""
    d_new, hidden = w_fc.shape
    assert w_proj.shape == (hidden, d_new)
    assert b_fc.shape == (hidden,) and b_proj.shape == (d_new,)
    h_pad = _round_up(hidden, 128)
    ph = h_pad - hidden
    w1 = w_fc.astype(compute_dtype)
    w2 = w_proj.astype(compute_dtype)
    b1 = b_fc.astype(jnp.float32)
    if ph:
        w1 = jnp.pad(w1, ((0, 0), (0, ph)))
        w2 = jnp.pad(w2, ((0, ph), (0, 0)))
        b1 = jnp.pad(b1, (0, ph))
    return (w1, b1.reshape(1, h_pad), w2, b_proj.astype(jnp.float32).reshape(1, d_new))


def latent_mlp_rl(x, params, *, tm=512, block_h=None, approximate_gelu=True,
                  elementwise_dtype=None):
    """Forward pass of LatentMLP_RL (eval mode; dropout is the identity).

    Args:
      x:      (..., d_new)
      params: output of prepare_params() (padded, pre-cast weights/biases)
      tm:     requested row tile (default 512; auto-shrunk to fit VMEM / small n)
      block_h: force a hidden-dim tile (multiple of 128); None = auto (resident
               weights when they fit the per-TC VMEM budget, tiled otherwise)
      approximate_gelu: tanh GELU (fast, EUP) vs exact erf (torch nn.GELU default)
      elementwise_dtype: dtype of the bias+GELU region; None = auto per chip gen
    """
    w1, b1, w2, b2 = params
    d_new, h_pad = w1.shape
    assert x.shape[-1] == d_new
    compute_dtype = w1.dtype

    lead = x.shape[:-1]
    x2 = x.reshape(-1, d_new)
    n = x2.shape[0]
    out_dtype = x.dtype

    xbytes = jnp.dtype(x.dtype).itemsize
    cbytes = jnp.dtype(compute_dtype).itemsize

    if not approximate_gelu:
        ew_dtype = jnp.float32                      # exact parity path stays f32
    elif elementwise_dtype is not None:
        ew_dtype = jnp.dtype(elementwise_dtype)
    else:
        ew_dtype = _default_elementwise_dtype(compute_dtype)
    ewbytes = jnp.dtype(ew_dtype).itemsize

    capacity = _vmem_capacity_bytes()               # per TensorCore
    ceiling = int(capacity * 0.85)                  # leave Mosaic scratch headroom

    th = _choose_block_h(h_pad, d_new, cbytes, capacity, block_h)
    nh = h_pad // th
    w_bufs = 1 if nh == 1 else 2                    # resident -> single-buffered

    # Row tile: dtype-aware sublane minimum, shrink for small n / VMEM budget.
    sub = max(8, 32 // xbytes)
    tm_eff = max(sub, min(_round_up(int(tm), sub), _round_up(n, sub)))
    fixed = w_bufs * 2 * d_new * th * cbytes + w_bufs * th * 4 + d_new * 4

    def _footprint(rows):
        return (fixed
                + 2 * rows * d_new * xbytes              # x tiles (double-buffered)
                + 2 * rows * d_new * xbytes              # out tiles
                + rows * d_new * 4                       # f32 accumulator scratch
                + rows * th * (4 + ewbytes + cbytes)     # h intermediates
                + rows * d_new * 4)                      # y f32

    while tm_eff > sub and _footprint(tm_eff) > int(0.8 * ceiling):
        tm_eff = max(sub, _round_up(tm_eff // 2, sub))

    grid = (pl.cdiv(n, tm_eff), nh)
    vmem_limit = int(min(ceiling,
                         max(16 << 20, int(1.5 * _footprint(tm_eff)) + (4 << 20))))

    cost = pl.CostEstimate(
        flops=4 * n * d_new * h_pad,
        transcendentals=n * h_pad,
        bytes_accessed=(n * d_new * xbytes + 2 * d_new * h_pad * cbytes
                        + (h_pad + d_new) * 4 + n * d_new * xbytes))

    kernel = functools.partial(_mlp_kernel, compute_dtype=compute_dtype,
                               ew_dtype=ew_dtype, approximate=approximate_gelu)

    def _call(single_buffer_weights):
        if single_buffer_weights and hasattr(pl, "Buffered"):
            def const_spec(shape, index_map):
                return pl.BlockSpec(shape, index_map, pipeline_mode=pl.Buffered(1))
        else:
            def const_spec(shape, index_map):
                return pl.BlockSpec(shape, index_map)
        # Resident weights (nh==1): single-buffer. Hidden-tiled weights (nh>1):
        # keep default double-buffering so the weight DMA pipelines with compute.
        w_spec = const_spec if nh == 1 else (lambda s, m: pl.BlockSpec(s, m))
        in_specs = [
            pl.BlockSpec((tm_eff, d_new), lambda i, k: (i, 0)),   # x row tile
            w_spec((d_new, th), lambda i, k: (0, k)),             # W1 tile
            w_spec((1, th), lambda i, k: (0, k)),                 # b1 tile
            w_spec((th, d_new), lambda i, k: (k, 0)),             # W2 tile
            const_spec((1, d_new), lambda i, k: (0, 0)),          # b2 (constant)
        ]
        return pl.pallas_call(
            kernel,
            out_shape=jax.ShapeDtypeStruct((n, d_new), out_dtype),
            grid_spec=pltpu.PrefetchScalarGridSpec(
                num_scalar_prefetch=0,
                grid=grid,
                in_specs=in_specs,
                out_specs=pl.BlockSpec((tm_eff, d_new), lambda i, k: (i, 0)),
                scratch_shapes=[pltpu.VMEM((tm_eff, d_new), jnp.float32)],
            ),
            compiler_params=pltpu.CompilerParams(
                dimension_semantics=("parallel", "arbitrary"),
                vmem_limit_bytes=vmem_limit),
            cost_estimate=cost,
        )(x2, w1, b1, w2, b2)

    try:
        out2 = _call(single_buffer_weights=True)
    except Exception:
        # Fallback for jax versions without BlockSpec(pipeline_mode=pl.Buffered(1)).
        out2 = _call(single_buffer_weights=False)

    return out2.reshape(*lead, d_new)


def init_params(key, d_new, ff_latent_hidden, bias=True, dtype=jnp.float32):
    """torch.nn.Linear-style init, stored directly in (in, out) layout."""
    k1, k2, k3, k4 = jax.random.split(key, 4)
    bound_fc = 1.0 / math.sqrt(d_new)
    bound_pr = 1.0 / math.sqrt(ff_latent_hidden)
    w_fc = jax.random.uniform(k1, (d_new, ff_latent_hidden), dtype,
                              minval=-bound_fc, maxval=bound_fc)
    w_proj = jax.random.uniform(k2, (ff_latent_hidden, d_new), dtype,
                                minval=-bound_pr, maxval=bound_pr)
    if bias:
        b_fc = jax.random.uniform(k3, (ff_latent_hidden,), dtype,
                                  minval=-bound_fc, maxval=bound_fc)
        b_proj = jax.random.uniform(k4, (d_new,), dtype,
                                    minval=-bound_pr, maxval=bound_pr)
    else:
        b_fc = jnp.zeros((ff_latent_hidden,), dtype)
        b_proj = jnp.zeros((d_new,), dtype)
    return w_fc, b_fc, w_proj, b_proj


def _reference(x, w_fc, b_fc, w_proj, b_proj, approximate):
    h = x @ w_fc + b_fc
    h = _gelu(h, approximate)
    return h @ w_proj + b_proj


if __name__ == "__main__":
    key = jax.random.PRNGKey(0)
    kx, kp, kb, kc = jax.random.split(key, 4)

    batch, seq, d_new, hidden = 2, 8, 32, 64
    x = jax.random.normal(kx, (batch, seq, d_new), jnp.float32)
    w_fc, b_fc, w_proj, b_proj = init_params(kp, d_new, hidden, bias=True)

    # 1) f32 compute + exact erf GELU: tight parity with torch's nn.GELU default.
    p32 = prepare_params(w_fc, b_fc, w_proj, b_proj, compute_dtype=jnp.float32)
    y1 = latent_mlp_rl(x, p32, approximate_gelu=False)
    jax.block_until_ready(y1)
    assert y1.shape == (batch, seq, d_new)
    assert jnp.allclose(y1, _reference(x, w_fc, b_fc, w_proj, b_proj, False),
                        atol=1e-5, rtol=1e-5)

    # 2) Default perf path: bf16 matmuls (f32 MXU accumulation) + tanh GELU.
    pbf = prepare_params(w_fc, b_fc, w_proj, b_proj)
    y2 = latent_mlp_rl(x, pbf)
    jax.block_until_ready(y2)
    assert jnp.allclose(y2, _reference(x, w_fc, b_fc, w_proj, b_proj, True),
                        atol=5e-2, rtol=5e-2)

    # 3) Ragged token count: multi-step grid with a masked partial edge tile.
    xr = jax.random.normal(kb, (3, 101, d_new), jnp.float32)
    y3 = latent_mlp_rl(xr, p32, tm=128, approximate_gelu=False)
    jax.block_until_ready(y3)
    assert y3.shape == (3, 101, d_new)
    assert jnp.allclose(y3, _reference(xr, w_fc, b_fc, w_proj, b_proj, False),
                        atol=1e-5, rtol=1e-5)

    # 4) Tiny n: a single partial row tile.
    xt = jax.random.normal(kc, (1, 5, d_new), jnp.float32)
    y4 = latent_mlp_rl(xt, p32, approximate_gelu=False)
    jax.block_until_ready(y4)
    assert jnp.allclose(y4, _reference(xt, w_fc, b_fc, w_proj, b_proj, False),
                        atol=1e-5, rtol=1e-5)

    # 5) Hidden-dim reduction axis (the v7x large-weight path), forced small.
    wf2, bf2, wp2, bp2 = init_params(jax.random.PRNGKey(1), d_new, 256, bias=True)
    pbig = prepare_params(wf2, bf2, wp2, bp2, compute_dtype=jnp.float32)
    y5 = latent_mlp_rl(x, pbig, block_h=128, approximate_gelu=False)
    jax.block_until_ready(y5)
    assert jnp.allclose(y5, _reference(x, wf2, bf2, wp2, bp2, False),
                        atol=1e-5, rtol=1e-5)

    print("KERNEL_OK")
</pallas_src>

<mosaic_0001>
module attributes {stable_mosaic.version = 11 : i64} {
  func.func @_mlp_kernel(%arg0: i32, %arg1: i32, %arg2: memref<16x32xf32, #tpu.memory_space<vmem>>, %arg3: memref<32x128xf32, #tpu.memory_space<vmem>>, %arg4: memref<1x128xf32, #tpu.memory_space<vmem>>, %arg5: memref<128x32xf32, #tpu.memory_space<vmem>>, %arg6: memref<1x32xf32, #tpu.memory_space<vmem>>, %arg7: memref<16x32xf32, #tpu.memory_space<vmem>>, %arg8: memref<16x32xf32, #tpu.memory_space<vmem>>) attributes {dimension_semantics = [#tpu.dimension_semantics<parallel>, #tpu.dimension_semantics<arbitrary>], iteration_bounds = array<i64: 1, 1>, scalar_prefetch = 0 : i64, scratch_operands = 1 : i64, tpu.core_type = #tpu.core_type<tc>, window_params = [{transform_indices = @transform_0, window_bounds = array<i64: 16, 32>}, {pipeline_mode = #tpu.pipeline_mode<synchronous>, transform_indices = @transform_1, window_bounds = array<i64: 32, 128>}, {pipeline_mode = #tpu.pipeline_mode<synchronous>, transform_indices = @transform_2, window_bounds = array<i64: 1, 128>}, {pipeline_mode = #tpu.pipeline_mode<synchronous>, transform_indices = @transform_3, window_bounds = array<i64: 128, 32>}, {pipeline_mode = #tpu.pipeline_mode<synchronous>, transform_indices = @transform_4, window_bounds = array<i64: 1, 32>}, {transform_indices = @transform_5, window_bounds = array<i64: 16, 32>}]} {
    %c0_i32 = arith.constant 0 : i32
    %0 = arith.cmpi eq, %arg1, %c0_i32 : i32
    %1 = arith.extui %0 : i1 to i32
    %c0_i32_0 = arith.constant 0 : i32
    %2 = arith.cmpi ne, %1, %c0_i32_0 : i32
    scf.if %2 {
      %cst_18 = arith.constant 0.000000e+00 : f32
      %25 = vector.broadcast %cst_18 : f32 to vector<16x32xf32>
      %c0_19 = arith.constant 0 : index
      %c0_20 = arith.constant 0 : index
      %26 = vector.load %arg8[%c0_19, %c0_20] : memref<16x32xf32, #tpu.memory_space<vmem>>, vector<16x32xf32>
      tpu.vector_store %arg8[%c0_19, %c0_20], %25 {strides = array<i32>} : memref<16x32xf32, #tpu.memory_space<vmem>>, vector<16x32xf32>,
    } else {
    }
    %c0 = arith.constant 0 : index
    %c0_1 = arith.constant 0 : index
    %3 = vector.load %arg2[%c0, %c0_1] : memref<16x32xf32, #tpu.memory_space<vmem>>, vector<16x32xf32>
    %c0_2 = arith.constant 0 : index
    %c0_3 = arith.constant 0 : index
    %4 = vector.load %arg3[%c0_2, %c0_3] : memref<32x128xf32, #tpu.memory_space<vmem>>, vector<32x128xf32>
    %cst = arith.constant dense<0.000000e+00> : vector<16x128xf32>
    %5 = tpu.matmul %3, %4, %cst {dimension_numbers = #tpu.dot_dimension_numbers<[1], [0], [0], [1], [0, 0, 1, 1], [], []>} : vector<16x32xf32>, vector<32x128xf32>, vector<16x128xf32> -> vector<16x128xf32>
    %c0_4 = arith.constant 0 : index
    %c0_5 = arith.constant 0 : index
    %6 = vector.load %arg4[%c0_4, %c0_5] : memref<1x128xf32, #tpu.memory_space<vmem>>, vector<1x128xf32>
    %7 = vector.broadcast %6 : vector<1x128xf32> to vector<16x128xf32>
    %8 = arith.addf %5, %7 : vector<16x128xf32>
    %cst_6 = arith.constant 5.000000e-01 : f32
    %9 = vector.broadcast %cst_6 : f32 to vector<16x128xf32>
    %10 = arith.mulf %9, %8 : vector<16x128xf32>
    %cst_7 = arith.constant 0.707106769 : f32
    %11 = vector.broadcast %cst_7 : f32 to vector<16x128xf32>
    %12 = arith.mulf %8, %11 : vector<16x128xf32>
    %13 = math.erf %12 : vector<16x128xf32>
    %cst_8 = arith.constant 1.000000e+00 : f32
    %14 = vector.broadcast %cst_8 : f32 to vector<16x128xf32>
    %15 = arith.addf %14, %13 : vector<16x128xf32>
    %16 = arith.mulf %10, %15 : vector<16x128xf32>
    %c0_9 = arith.constant 0 : index
    %c0_10 = arith.constant 0 : index
    %17 = vector.load %arg8[%c0_9, %c0_10] : memref<16x32xf32, #tpu.memory_space<vmem>>, vector<16x32xf32>
    %c0_11 = arith.constant 0 : index
    %c0_12 = arith.constant 0 : index
    %18 = vector.load %arg5[%c0_11, %c0_12] : memref<128x32xf32, #tpu.memory_space<vmem>>, vector<128x32xf32>
    %cst_13 = arith.constant dense<0.000000e+00> : vector<16x32xf32>
    %19 = tpu.matmul %16, %18, %cst_13 {dimension_numbers = #tpu.dot_dimension_numbers<[1], [0], [0], [1], [0, 0, 1, 1], [], []>} : vector<16x128xf32>, vector<128x32xf32>, vector<16x32xf32> -> vector<16x32xf32>
    %20 = arith.addf %17, %19 : vector<16x32xf32>
    %c0_14 = arith.constant 0 : index
    %c0_15 = arith.constant 0 : index
    %21 = vector.load %arg8[%c0_14, %c0_15] : memref<16x32xf32, #tpu.memory_space<vmem>>, vector<16x32xf32>
    tpu.vector_store %arg8[%c0_14, %c0_15], %20 {strides = array<i32>} : memref<16x32xf32, #tpu.memory_space<vmem>>, vector<16x32xf32>,
    %c0_i32_16 = arith.constant 0 : i32
    %22 = arith.cmpi eq, %arg1, %c0_i32_16 : i32
    %23 = arith.extui %22 : i1 to i32
    %c0_i32_17 = arith.constant 0 : i32
    %24 = arith.cmpi ne, %23, %c0_i32_17 : i32
    scf.if %24 {
      %c0_18 = arith.constant 0 : index
      %c0_19 = arith.constant 0 : index
      %25 = vector.load %arg8[%c0_18, %c0_19] : memref<16x32xf32, #tpu.memory_space<vmem>>, vector<16x32xf32>
      %c0_20 = arith.constant 0 : index
      %c0_21 = arith.constant 0 : index
      %26 = vector.load %arg6[%c0_20, %c0_21] : memref<1x32xf32, #tpu.memory_space<vmem>>, vector<1x32xf32>
      %27 = vector.broadcast %26 : vector<1x32xf32> to vector<16x32xf32>
      %28 = arith.addf %25, %27 : vector<16x32xf32>
      %c0_22 = arith.constant 0 : index
      %c0_23 = arith.constant 0 : index
      %29 = vector.load %arg7[%c0_22, %c0_23] : memref<16x32xf32, #tpu.memory_space<vmem>>, vector<16x32xf32>
      tpu.vector_store %arg7[%c0_22, %c0_23], %28 {strides = array<i32>} : memref<16x32xf32, #tpu.memory_space<vmem>>, vector<16x32xf32>,
    } else {
    }
    return
  }
  func.func @transform_0(%arg0: i32, %arg1: i32) -> (i32, i32) {
    %c0_i32 = arith.constant 0 : i32
    %c0_i32_0 = arith.constant 0 : i32
    return %arg0, %c0_i32 : i32, i32
  }
  func.func @transform_1(%arg0: i32, %arg1: i32) -> (i32, i32) {
    %c0_i32 = arith.constant 0 : i32
    %c0_i32_0 = arith.constant 0 : i32
    return %c0_i32, %arg1 : i32, i32
  }
  func.func @transform_2(%arg0: i32, %arg1: i32) -> (i32, i32) {
    %c0_i32 = arith.constant 0 : i32
    %c0_i32_0 = arith.constant 0 : i32
    return %c0_i32, %arg1 : i32, i32
  }
  func.func @transform_3(%arg0: i32, %arg1: i32) -> (i32, i32) {
    %c0_i32 = arith.constant 0 : i32
    %c0_i32_0 = arith.constant 0 : i32
    return %arg1, %c0_i32 : i32, i32
  }
  func.func @transform_4(%arg0: i32, %arg1: i32) -> (i32, i32) {
    %c0_i32 = arith.constant 0 : i32
    %c0_i32_0 = arith.constant 0 : i32
    %c0_i32_1 = arith.constant 0 : i32
    return %c0_i32, %c0_i32_0 : i32, i32
  }
  func.func @transform_5(%arg0: i32, %arg1: i32) -> (i32, i32) {
    %c0_i32 = arith.constant 0 : i32
    %c0_i32_0 = arith.constant 0 : i32
    return %arg0, %c0_i32 : i32, i32
  }
}

module attributes {stable_mosaic.version = 11 : i64} {
  func.func @_mlp_kernel(%arg0: i32, %arg1: i32, %arg2: memref<16x32xf32, #tpu.memory_space<vmem>>, %arg3: memref<32x128xf32, #tpu.memory_space<vmem>>, %arg4: memref<1x128xf32, #tpu.memory_space<vmem>>, %arg5: memref<128x32xf32, #tpu.memory_space<vmem>>, %arg6: memref<1x32xf32, #tpu.memory_space<vmem>>, %arg7: memref<16x32xf32, #tpu.memory_space<vmem>>, %arg8: memref<16x32xf32, #tpu.memory_space<vmem>>) attributes {dimension_semantics = [#tpu.dimension_semantics<parallel>, #tpu.dimension_semantics<arbitrary>], iteration_bounds = array<i64: 1, 1>, scalar_prefetch = 0 : i64, scratch_operands = 1 : i64, tpu.core_type = #tpu.core_type<tc>, window_params = [{transform_indices = @transform_0, window_bounds = array<i64: 16, 32>}, {transform_indices = @transform_1, window_bounds = array<i64: 32, 128>}, {transform_indices = @transform_2, window_bounds = array<i64: 1, 128>}, {transform_indices = @transform_3, window_bounds = array<i64: 128, 32>}, {pipeline_mode = #tpu.pipeline_mode<synchronous>, transform_indices = @transform_4, window_bounds = array<i64: 1, 32>}, {transform_indices = @transform_5, window_bounds = array<i64: 16, 32>}]} {
    %c0_i32 = arith.constant 0 : i32
    %0 = arith.cmpi eq, %arg1, %c0_i32 : i32
    %1 = arith.extui %0 : i1 to i32
    %c0_i32_0 = arith.constant 0 : i32
    %2 = arith.cmpi ne, %1, %c0_i32_0 : i32
    scf.if %2 {
      %cst_18 = arith.constant 0.000000e+00 : f32
      %25 = vector.broadcast %cst_18 : f32 to vector<16x32xf32>
      %c0_19 = arith.constant 0 : index
      %c0_20 = arith.constant 0 : index
      %26 = vector.load %arg8[%c0_19, %c0_20] : memref<16x32xf32, #tpu.memory_space<vmem>>, vector<16x32xf32>
      tpu.vector_store %arg8[%c0_19, %c0_20], %25 {strides = array<i32>} : memref<16x32xf32, #tpu.memory_space<vmem>>, vector<16x32xf32>,
    } else {
    }
    %c0 = arith.constant 0 : index
    %c0_1 = arith.constant 0 : index
    %3 = vector.load %arg2[%c0, %c0_1] : memref<16x32xf32, #tpu.memory_space<vmem>>, vector<16x32xf32>
    %c0_2 = arith.constant 0 : index
    %c0_3 = arith.constant 0 : index
    %4 = vector.load %arg3[%c0_2, %c0_3] : memref<32x128xf32, #tpu.memory_space<vmem>>, vector<32x128xf32>
    %cst = arith.constant dense<0.000000e+00> : vector<16x128xf32>
    %5 = tpu.matmul %3, %4, %cst {dimension_numbers = #tpu.dot_dimension_numbers<[1], [0], [0], [1], [0, 0, 1, 1], [], []>} : vector<16x32xf32>, vector<32x128xf32>, vector<16x128xf32> -> vector<16x128xf32>
    %c0_4 = arith.constant 0 : index
    %c0_5 = arith.constant 0 : index
    %6 = vector.load %arg4[%c0_4, %c0_5] : memref<1x128xf32, #tpu.memory_space<vmem>>, vector<1x128xf32>
    %7 = vector.broadcast %6 : vector<1x128xf32> to vector<16x128xf32>
    %8 = arith.addf %5, %7 : vector<16x128xf32>
    %cst_6 = arith.constant 5.000000e-01 : f32
    %9 = vector.broadcast %cst_6 : f32 to vector<16x128xf32>
    %10 = arith.mulf %9, %8 : vector<16x128xf32>
    %cst_7 = arith.constant 0.707106769 : f32
    %11 = vector.broadcast %cst_7 : f32 to vector<16x128xf32>
    %12 = arith.mulf %8, %11 : vector<16x128xf32>
    %13 = math.erf %12 : vector<16x128xf32>
    %cst_8 = arith.constant 1.000000e+00 : f32
    %14 = vector.broadcast %cst_8 : f32 to vector<16x128xf32>
    %15 = arith.addf %14, %13 : vector<16x128xf32>
    %16 = arith.mulf %10, %15 : vector<16x128xf32>
    %c0_9 = arith.constant 0 : index
    %c0_10 = arith.constant 0 : index
    %17 = vector.load %arg8[%c0_9, %c0_10] : memref<16x32xf32, #tpu.memory_space<vmem>>, vector<16x32xf32>
    %c0_11 = arith.constant 0 : index
    %c0_12 = arith.constant 0 : index
    %18 = vector.load %arg5[%c0_11, %c0_12] : memref<128x32xf32, #tpu.memory_space<vmem>>, vector<128x32xf32>
    %cst_13 = arith.constant dense<0.000000e+00> : vector<16x32xf32>
    %19 = tpu.matmul %16, %18, %cst_13 {dimension_numbers = #tpu.dot_dimension_numbers<[1], [0], [0], [1], [0, 0, 1, 1], [], []>} : vector<16x128xf32>, vector<128x32xf32>, vector<16x32xf32> -> vector<16x32xf32>
    %20 = arith.addf %17, %19 : vector<16x32xf32>
    %c0_14 = arith.constant 0 : index
    %c0_15 = arith.constant 0 : index
    %21 = vector.load %arg8[%c0_14, %c0_15] : memref<16x32xf32, #tpu.memory_space<vmem>>, vector<16x32xf32>
    tpu.vector_store %arg8[%c0_14, %c0_15], %20 {strides = array<i32>} : memref<16x32xf32, #tpu.memory_space<vmem>>, vector<16x32xf32>,
    %c0_i32_16 = arith.constant 0 : i32
    %22 = arith.cmpi eq, %arg1, %c0_i32_16 : i32
    %23 = arith.extui %22 : i1 to i32
    %c0_i32_17 = arith.constant 0 : i32
    %24 = arith.cmpi ne, %23, %c0_i32_17 : i32
    scf.if %24 {
      %c0_18 = arith.constant 0 : index
      %c0_19 = arith.constant 0 : index
      %25 = vector.load %arg8[%c0_18, %c0_19] : memref<16x32xf32, #tpu.memory_space<vmem>>, vector<16x32xf32>
      %c0_20 = arith.constant 0 : index
      %c0_21 = arith.constant 0 : index
      %26 = vector.load %arg6[%c0_20, %c0_21] : memref<1x32xf32, #tpu.memory_space<vmem>>, vector<1x32xf32>
      %27 = vector.broadcast %26 : vector<1x32xf32> to vector<16x32xf32>
      %28 = arith.addf %25, %27 : vector<16x32xf32>
      %c0_22 = arith.constant 0 : index
      %c0_23 = arith.constant 0 : index
      %29 = vector.load %arg7[%c0_22, %c0_23] : memref<16x32xf32, #tpu.memory_space<vmem>>, vector<16x32xf32>
      tpu.vector_store %arg7[%c0_22, %c0_23], %28 {strides = array<i32>} : memref<16x32xf32, #tpu.memory_space<vmem>>, vector<16x32xf32>,
    } else {
    }
    return
  }
  func.func @transform_0(%arg0: i32, %arg1: i32) -> (i32, i32) {
    %c0_i32 = arith.constant 0 : i32
    %c0_i32_0 = arith.constant 0 : i32
    return %arg0, %c0_i32 : i32, i32
  }
  func.func @transform_1(%arg0: i32, %arg1: i32) -> (i32, i32) {
    %c0_i32 = arith.constant 0 : i32
    %c0_i32_0 = arith.constant 0 : i32
    return %c0_i32, %arg1 : i32, i32
  }
  func.func @transform_2(%arg0: i32, %arg1: i32) -> (i32, i32) {
    %c0_i32 = arith.constant 0 : i32
    %c0_i32_0 = arith.constant 0 : i32
    return %c0_i32, %arg1 : i32, i32
  }
  func.func @transform_3(%arg0: i32, %arg1: i32) -> (i32, i32) {
    %c0_i32 = arith.constant 0 : i32
    %c0_i32_0 = arith.constant 0 : i32
    return %arg1, %c0_i32 : i32, i32
  }
  func.func @transform_4(%arg0: i32, %arg1: i32) -> (i32, i32) {
    %c0_i32 = arith.constant 0 : i32
    %c0_i32_0 = arith.constant 0 : i32
    %c0_i32_1 = arith.constant 0 : i32
    return %c0_i32, %c0_i32_0 : i32, i32
  }
  func.func @transform_5(%arg0: i32, %arg1: i32) -> (i32, i32) {
    %c0_i32 = arith.constant 0 : i32
    %c0_i32_0 = arith.constant 0 : i32
    return %arg0, %c0_i32 : i32, i32
  }
}

</mosaic_0001>

<bundles_post_ra>
// kernel: tpu_custom_call.1
= control target key start
LH: loop header
LB: loop body
LE: loop exit
PB: predicated region body
PF: predicated region fallthrough
CT: control target
= control target key end

     0   :  { %vm25_vm0 = vcmask 261120   ;;  %s534_s0 = inlined_call_operand.vmem [shape: f32[16,32], index: 0, kind: input, shape index: {}]   ;;  %s535_s1 = inlined_call_operand.vmem [shape: f32[32,128], index: 1, kind: input, shape index: {}]   ;;  %s536_s2 = inlined_call_operand.vmem [shape: f32[1,128], index: 2, kind: input, shape index: {}]   ;;  %s537_s3 = inlined_call_operand.vmem [shape: f32[128,32], index: 3, kind: input, shape index: {}]   ;;  %s538_s4 = inlined_call_operand.vmem [shape: f32[1,32], index: 4, kind: input, shape index: {}]   ;;  %s539_s5 = inlined_call_operand.hbm [shape: f32[16,32], index: 5, kind: output, shape index: {}]  }
   0x1   :  { %v30_v0 = vld [vmem:[%s535_s1] sm:$0xff]  ;;  %v31_v1 = vld [vmem:[%s535_s1 + $0x8] sm:$0xff]  ;;  %v32_v2 = vld [vmem:[%s535_s1 + $0x10] sm:$0xff] }
   0x2   :  { %v336_v3 = vpack.c.bf16 %v31_v1, %v30_v0  ;;  %v33_v4 = vld [vmem:[%s535_s1 + $0x18] sm:$0xff]  ;;  %v28_v5 = vld [vmem:[%s534_s0] sm:$0xff]  ;;  %v136_v8 = vld [vmem:[%s537_s3 + $0x8] sm:$0xff] }
   0x3   :  { %v340_v6 = vpack.c.bf16 %v33_v4, %v32_v2  ;;  %298 = vmatprep.mubr.msk.f32.mxu0 %vm25_vm0, %v28_v5  ;;  %v135_v7 = vld [vmem:[%s537_s3] sm:$0xff]  ;;  %v137_v9 = vld [vmem:[%s537_s3 + $0x10] sm:$0xff]  ;;  %v138_v11 = vld [vmem:[%s537_s3 + $0x18] sm:$0xff] }
   0x4   :  { %337 = vmatprep.subr.bf16.mxu0 %v336_v3  ;;  %v344_v10 = vpack.c.bf16 %v136_v8, %v135_v7  ;;  %v348_v12 = vpack.c.bf16 %v138_v11, %v137_v9  ;;  %v139_v13 = vld [vmem:[%s537_s3 + $0x20] sm:$0xff]  ;;  %v140_v14 = vld [vmem:[%s537_s3 + $0x28] sm:$0xff] }
   0x5   :  { %339 = vmatpush3.bf16.msra.mxu0 %v336_v3 }
   0x6   :  { %10 = vsyncpa [#allocation4], 0  ;;  %341 = vmatprep.subr.bf16.mxu0 %v340_v6  ;;  %345 = vmatprep.subr.bf16.mxu1 %v344_v10  ;;  %v352_v15 = vpack.c.bf16 %v140_v14, %v139_v13  ;;  %v29_v16 = vld [vmem:[%s534_s0 + $0x8] sm:$0xff]  ;;  %v141_v17 = vld [vmem:[%s537_s3 + $0x30] sm:$0xff]  ;;  %v408_v32 = vmov 0.0   ;;  %s409_s11 = smov [#allocation3]  }
   0x7   :  { %347 = vmatpush3.bf16.msra.mxu1 %v344_v10  ;;  %v142_v18 = vld [vmem:[%s537_s3 + $0x38] sm:$0xff]  ;;  %v143_v20 = vld [vmem:[%s537_s3 + $0x40] sm:$0xff]  ;;  %v144_v21 = vld [vmem:[%s537_s3 + $0x48] sm:$0xff]  ;;  %27 = vst.msk [vmem:[#allocation2 + $0x8] sm:$0xff] %vm25_vm0, %v408_v32  ;;  %s251_s12 = sshll.u32 %s409_s11, 4  ;;  %s252_s12 = int_to_ptr.vmem [resolvable:$true] %s251_s12 }
   0x8   :  { %349 = vmatprep.subr.bf16.mxu1 %v348_v12  ;;  %v356_v19 = vpack.c.bf16 %v142_v18, %v141_v17  ;;  %v360_v22 = vpack.c.bf16 %v144_v21, %v143_v20  ;;  %v145_v23 = vld [vmem:[%s537_s3 + $0x50] sm:$0xff]  ;;  %v146_v24 = vld [vmem:[%s537_s3 + $0x58] sm:$0xff]  ;;  %v147_v26 = vld [vmem:[%s537_s3 + $0x60] sm:$0xff]  ;;  %26 = vst.msk [vmem:[#allocation2] sm:$0xff] %vm25_vm0, %v408_v32  ;;  %s384_s13 = scalar_lea.vmem %s252_s12, 256  ;;  %p389_p1 = scmp.lt.s32.totalorder %s252_s12, %s252_s12 }
   0x9   :  { %343 = vmatpush3.bf16.msra.mxu0 %v340_v6  ;;  %v364_v25 = vpack.c.bf16 %v146_v24, %v145_v23  ;;  %v148_v27 = vld [vmem:[%s537_s3 + $0x68] sm:$0xff]  ;;  %v149_v29 = vld [vmem:[%s537_s3 + $0x70] sm:$0xff]  ;;  %v150_v30 = vld [vmem:[%s537_s3 + $0x78] sm:$0xff]  ;;  %p385_p0 = scmp.ne.s32.totalorder %s252_s12, %s384_s13  ;;  %p390_p2 = scmp.lt.s32.totalorder %s384_s13, %s384_s13 }
   0xa   :  { %v368_v28 = vpack.c.bf16 %v148_v27, %v147_v26  ;;  %v372_v31 = vpack.c.bf16 %v150_v30, %v149_v29  ;;  %v262_v33 = vld [vmem:[%s536_s2] ss:$0 sm:$0xff] }
   0xb   :  { %351 = vmatpush3.bf16.msra.mxu1 %v348_v12  ;;  %v265_v54 = vld [vmem:[%s538_s4] ss:$0 sm:$0xff]  ;;  %p391_p3 = por %p390_p2, %p389_p1 }
   0xc   :  { %299 = vmatmul.mubr.msk.f32.vlgmr.msra.gmra.mrb[0].mxu0 %vm25_vm0, %v29_v16  ;;  %353 = vmatprep.subr.bf16.mxu1 %v352_v15 }
   0xd   :  { %p392_p4 = pnand %p391_p3, %p385_p0 }
   0xe   :  { %v134_v48 = vld [vmem:[#allocation2 + $0x8] sm:$0xff] }
   0xf   :  { %355 = vmatpush3.bf16.msra.mxu1 %v352_v15  ;;  %v133_v49 = vld [vmem:[#allocation2] sm:$0xff] }
  0x10   :  { %357 = vmatprep.subr.bf16.mxu1 %v356_v19 }
  0x13   :  { %359 = vmatpush3.bf16.msra.mxu1 %v356_v19 }
  0x14   :  { %361 = vmatprep.subr.bf16.mxu1 %v360_v22 }
  0x17   :  { %363 = vmatpush3.bf16.msra.mxu1 %v360_v22 }
  0x18   :  { %365 = vmatprep.subr.bf16.mxu1 %v364_v25 }
  0x1b   :  { %367 = vmatpush3.bf16.msra.mxu1 %v364_v25 }
  0x1c   :  { %369 = vmatprep.subr.bf16.mxu1 %v368_v28 }
  0x1f   :  { %371 = vmatpush3.bf16.msra.mxu1 %v368_v28 }
  0x20   :  { %373 = vmatprep.subr.bf16.mxu1 %v372_v31 }
  0x23   :  { %375 = vmatpush3.bf16.msra.mxu1 %v372_v31 }
  0xdf   :  { %v300_v34 = vpop.f32.mrb[0].mxu0 }
  0xe0   :  { %v120_v35 = vadd.f32 %v300_v34, %v262_v33  ;;  %v114_v36 = vpop.f32.mrb[1].mxu0 }
  0xe1   :  { %v115_v37 = vadd.f32 %v262_v33, %v114_v36 }
  0xe2   :  { %v126_v38 = vmul.f32 0.70710677, %v120_v35  ;;  %v124_v45 = vmul.f32 0.5, %v120_v35 }
  0xe3   :  { %v125_v39 = vmul.f32 0.70710677, %v115_v37  ;;  %v123_v43 = vmul.f32 0.5, %v115_v37 }
  0xe4   :  { %380 = verf.f32 %v126_v38 }
  0xe5   :  { %382 = verf.f32 %v125_v39 }
  0xee   :  { %v381_v40 = vpop.eup %380 }
  0xef   :  { %v383_v41 = vpop.eup %382  ;;  %v130_v42 = vadd.f32 1.0, %v381_v40 }
  0xf0   :  { %v129_v44 = vadd.f32 1.0, %v383_v41 }
  0xf1   :  { %v132_v47 = vmul.f32 %v130_v42, %v124_v45 }
  0xf2   :  { %v131_v46 = vmul.f32 %v129_v44, %v123_v43 }
  0xf4   :  { %333 = vmatprep.mubr.f32.mxu1 %v131_v46 }
  0xf5   :  { %334 = vmatmul.mubr.f32.vlgmr.msra.gmra.mrb[0].mxu1 %v132_v47 }
 0x1c8   :  { %v335_v50 = vpop.f32.mrb[0].mxu1 }
 0x1c9   :  { %v227_v51 = vadd.f32 %v335_v50, %v134_v48  ;;  %v217_v52 = vpop.f32.mrb[1].mxu1 }
 0x1ca   :  { %v226_v53 = vadd.f32 %v217_v52, %v133_v49 }
 0x1cb   :  { %229 = vst.msk [vmem:[#allocation2 + $0x8] sm:$0xff] %vm25_vm0, %v227_v51 }
 0x1cc   :  { %228 = vst.msk [vmem:[#allocation2] sm:$0xff] %vm25_vm0, %v226_v53 }
 0x1d2   :  { %v234_v55 = vld [vmem:[#allocation2 + $0x8] sm:$0xff] }
 0x1d3   :  { %v233_v56 = vld [vmem:[#allocation2] sm:$0xff]  ;;  %v243_v57 = vadd.f32 %v265_v54, %v234_v55 }
 0x1d4   :  { %v242_v58 = vadd.f32 %v265_v54, %v233_v56 }
 0x1d5   :  { %245 = vst.msk [vmem:[#allocation3 + $0x8] sm:$0xff] %vm25_vm0, %v243_v57 }
 0x1d6   :  { %244 = vst.msk [vmem:[#allocation3] sm:$0xff] %vm25_vm0, %v242_v58 }
 0x1d7   :  { %395 = shalt.err (!%p392_p4)
}
 0x1d8   :  { %s396_s15 = scalar_lea.hbm %s539_s5, 256 }
 0x1d9   :  { %p397_p5 = scmp.ne.s32.totalorder %s539_s5, %s396_s15  ;;  %p400_p6 = scmp.lt.u32.totalorder %s396_s15, %s539_s5 }
 0x1db   :  { %p402_p7 = pnand %p400_p6, %p397_p5 }
 0x1dd   :  { %405 = shalt.err (!%p402_p7)
}
 0x1de   :  { %s410_s20 = smov 128   ;;  %s411_s21 = smov 8  }
 0x1df   :  { %257 = dma.vmem_to_hbm [thread:$0]  %s252_s12, 256, %s539_s5, [#allocation4], %s410_s20, %s410_s20, %s411_s21  }
 0x1e0   :  { %406 = dma.done.wait [#allocation4], 256  }
 0x1e1   :  { %407 = vsyncadd [#allocation4], 4294967040 }
 0x1e2   :  { %261 = vsyncpa [#allocation4], 1 }

// kernel: tpu_custom_call.1
= control target key start
LH: loop header
LB: loop body
LE: loop exit
PB: predicated region body
PF: predicated region fallthrough
CT: control target
= control target key end

     0   :  { %vm25_vm0 = vcmask 261120   ;;  %s534_s0 = inlined_call_operand.vmem [shape: f32[16,32], index: 0, kind: input, shape index: {}]   ;;  %s535_s1 = inlined_call_operand.vmem [shape: f32[32,128], index: 1, kind: input, shape index: {}]   ;;  %s536_s2 = inlined_call_operand.vmem [shape: f32[1,128], index: 2, kind: input, shape index: {}]   ;;  %s537_s3 = inlined_call_operand.vmem [shape: f32[128,32], index: 3, kind: input, shape index: {}]   ;;  %s538_s4 = inlined_call_operand.vmem [shape: f32[1,32], index: 4, kind: input, shape index: {}]   ;;  %s539_s5 = inlined_call_operand.hbm [shape: f32[16,32], index: 5, kind: output, shape index: {}]  }
   0x1   :  { %v30_v0 = vld [vmem:[%s535_s1] sm:$0xff]  ;;  %v31_v1 = vld [vmem:[%s535_s1 + $0x8] sm:$0xff]  ;;  %v32_v2 = vld [vmem:[%s535_s1 + $0x10] sm:$0xff] }
   0x2   :  { %v336_v3 = vpack.c.bf16 %v31_v1, %v30_v0  ;;  %v33_v4 = vld [vmem:[%s535_s1 + $0x18] sm:$0xff]  ;;  %v28_v5 = vld [vmem:[%s534_s0] sm:$0xff]  ;;  %v136_v8 = vld [vmem:[%s537_s3 + $0x8] sm:$0xff] }
   0x3   :  { %v340_v6 = vpack.c.bf16 %v33_v4, %v32_v2  ;;  %298 = vmatprep.mubr.msk.f32.mxu0 %vm25_vm0, %v28_v5  ;;  %v135_v7 = vld [vmem:[%s537_s3] sm:$0xff]  ;;  %v137_v9 = vld [vmem:[%s537_s3 + $0x10] sm:$0xff]  ;;  %v138_v11 = vld [vmem:[%s537_s3 + $0x18] sm:$0xff] }
   0x4   :  { %337 = vmatprep.subr.bf16.mxu0 %v336_v3  ;;  %v344_v10 = vpack.c.bf16 %v136_v8, %v135_v7  ;;  %v348_v12 = vpack.c.bf16 %v138_v11, %v137_v9  ;;  %v139_v13 = vld [vmem:[%s537_s3 + $0x20] sm:$0xff]  ;;  %v140_v14 = vld [vmem:[%s537_s3 + $0x28] sm:$0xff] }
   0x5   :  { %339 = vmatpush3.bf16.msra.mxu0 %v336_v3 }
   0x6   :  { %10 = vsyncpa [#allocation4], 0  ;;  %341 = vmatprep.subr.bf16.mxu0 %v340_v6  ;;  %345 = vmatprep.subr.bf16.mxu1 %v344_v10  ;;  %v352_v15 = vpack.c.bf16 %v140_v14, %v139_v13  ;;  %v29_v16 = vld [vmem:[%s534_s0 + $0x8] sm:$0xff]  ;;  %v141_v17 = vld [vmem:[%s537_s3 + $0x30] sm:$0xff]  ;;  %v408_v32 = vmov 0.0   ;;  %s409_s11 = smov [#allocation3]  }
   0x7   :  { %347 = vmatpush3.bf16.msra.mxu1 %v344_v10  ;;  %v142_v18 = vld [vmem:[%s537_s3 + $0x38] sm:$0xff]  ;;  %v143_v20 = vld [vmem:[%s537_s3 + $0x40] sm:$0xff]  ;;  %v144_v21 = vld [vmem:[%s537_s3 + $0x48] sm:$0xff]  ;;  %27 = vst.msk [vmem:[#allocation2 + $0x8] sm:$0xff] %vm25_vm0, %v408_v32  ;;  %s251_s12 = sshll.u32 %s409_s11, 4  ;;  %s252_s12 = int_to_ptr.vmem [resolvable:$true] %s251_s12 }
   0x8   :  { %349 = vmatprep.subr.bf16.mxu1 %v348_v12  ;;  %v356_v19 = vpack.c.bf16 %v142_v18, %v141_v17  ;;  %v360_v22 = vpack.c.bf16 %v144_v21, %v143_v20  ;;  %v145_v23 = vld [vmem:[%s537_s3 + $0x50] sm:$0xff]  ;;  %v146_v24 = vld [vmem:[%s537_s3 + $0x58] sm:$0xff]  ;;  %v147_v26 = vld [vmem:[%s537_s3 + $0x60] sm:$0xff]  ;;  %26 = vst.msk [vmem:[#allocation2] sm:$0xff] %vm25_vm0, %v408_v32  ;;  %s384_s13 = scalar_lea.vmem %s252_s12, 256  ;;  %p389_p1 = scmp.lt.s32.totalorder %s252_s12, %s252_s12 }
   0x9   :  { %343 = vmatpush3.bf16.msra.mxu0 %v340_v6  ;;  %v364_v25 = vpack.c.bf16 %v146_v24, %v145_v23  ;;  %v148_v27 = vld [vmem:[%s537_s3 + $0x68] sm:$0xff]  ;;  %v149_v29 = vld [vmem:[%s537_s3 + $0x70] sm:$0xff]  ;;  %v150_v30 = vld [vmem:[%s537_s3 + $0x78] sm:$0xff]  ;;  %p385_p0 = scmp.ne.s32.totalorder %s252_s12, %s384_s13  ;;  %p390_p2 = scmp.lt.s32.totalorder %s384_s13, %s384_s13 }
   0xa   :  { %v368_v28 = vpack.c.bf16 %v148_v27, %v147_v26  ;;  %v372_v31 = vpack.c.bf16 %v150_v30, %v149_v29  ;;  %v262_v33 = vld [vmem:[%s536_s2] ss:$0 sm:$0xff] }
   0xb   :  { %351 = vmatpush3.bf16.msra.mxu1 %v348_v12  ;;  %v265_v54 = vld [vmem:[%s538_s4] ss:$0 sm:$0xff]  ;;  %p391_p3 = por %p390_p2, %p389_p1 }
   0xc   :  { %299 = vmatmul.mubr.msk.f32.vlgmr.msra.gmra.mrb[0].mxu0 %vm25_vm0, %v29_v16  ;;  %353 = vmatprep.subr.bf16.mxu1 %v352_v15 }
   0xd   :  { %p392_p4 = pnand %p391_p3, %p385_p0 }
   0xe   :  { %v134_v48 = vld [vmem:[#allocation2 + $0x8] sm:$0xff] }
   0xf   :  { %355 = vmatpush3.bf16.msra.mxu1 %v352_v15  ;;  %v133_v49 = vld [vmem:[#allocation2] sm:$0xff] }
  0x10   :  { %357 = vmatprep.subr.bf16.mxu1 %v356_v19 }
  0x13   :  { %359 = vmatpush3.bf16.msra.mxu1 %v356_v19 }
  0x14   :  { %361 = vmatprep.subr.bf16.mxu1 %v360_v22 }
  0x17   :  { %363 = vmatpush3.bf16.msra.mxu1 %v360_v22 }
  0x18   :  { %365 = vmatprep.subr.bf16.mxu1 %v364_v25 }
  0x1b   :  { %367 = vmatpush3.bf16.msra.mxu1 %v364_v25 }
  0x1c   :  { %369 = vmatprep.subr.bf16.mxu1 %v368_v28 }
  0x1f   :  { %371 = vmatpush3.bf16.msra.mxu1 %v368_v28 }
  0x20   :  { %373 = vmatprep.subr.bf16.mxu1 %v372_v31 }
  0x23   :  { %375 = vmatpush3.bf16.msra.mxu1 %v372_v31 }
  0xdf   :  { %v300_v34 = vpop.f32.mrb[0].mxu0 }
  0xe0   :  { %v120_v35 = vadd.f32 %v300_v34, %v262_v33  ;;  %v114_v36 = vpop.f32.mrb[1].mxu0 }
  0xe1   :  { %v115_v37 = vadd.f32 %v262_v33, %v114_v36 }
  0xe2   :  { %v126_v38 = vmul.f32 0.70710677, %v120_v35  ;;  %v124_v45 = vmul.f32 0.5, %v120_v35 }
  0xe3   :  { %v125_v39 = vmul.f32 0.70710677, %v115_v37  ;;  %v123_v43 = vmul.f32 0.5, %v115_v37 }
  0xe4   :  { %380 = verf.f32 %v126_v38 }
  0xe5   :  { %382 = verf.f32 %v125_v39 }
  0xee   :  { %v381_v40 = vpop.eup %380 }
  0xef   :  { %v383_v41 = vpop.eup %382  ;;  %v130_v42 = vadd.f32 1.0, %v381_v40 }
  0xf0   :  { %v129_v44 = vadd.f32 1.0, %v383_v41 }
  0xf1   :  { %v132_v47 = vmul.f32 %v130_v42, %v124_v45 }
  0xf2   :  { %v131_v46 = vmul.f32 %v129_v44, %v123_v43 }
  0xf4   :  { %333 = vmatprep.mubr.f32.mxu1 %v131_v46 }
  0xf5   :  { %334 = vmatmul.mubr.f32.vlgmr.msra.gmra.mrb[0].mxu1 %v132_v47 }
 0x1c8   :  { %v335_v50 = vpop.f32.mrb[0].mxu1 }
 0x1c9   :  { %v227_v51 = vadd.f32 %v335_v50, %v134_v48  ;;  %v217_v52 = vpop.f32.mrb[1].mxu1 }
 0x1ca   :  { %v226_v53 = vadd.f32 %v217_v52, %v133_v49 }
 0x1cb   :  { %229 = vst.msk [vmem:[#allocation2 + $0x8] sm:$0xff] %vm25_vm0, %v227_v51 }
 0x1cc   :  { %228 = vst.msk [vmem:[#allocation2] sm:$0xff] %vm25_vm0, %v226_v53 }
 0x1d2   :  { %v234_v55 = vld [vmem:[#allocation2 + $0x8] sm:$0xff] }
 0x1d3   :  { %v233_v56 = vld [vmem:[#allocation2] sm:$0xff]  ;;  %v243_v57 = vadd.f32 %v265_v54, %v234_v55 }
 0x1d4   :  { %v242_v58 = vadd.f32 %v265_v54, %v233_v56 }
 0x1d5   :  { %245 = vst.msk [vmem:[#allocation3 + $0x8] sm:$0xff] %vm25_vm0, %v243_v57 }
 0x1d6   :  { %244 = vst.msk [vmem:[#allocation3] sm:$0xff] %vm25_vm0, %v242_v58 }
 0x1d7   :  { %395 = shalt.err (!%p392_p4)
}
 0x1d8   :  { %s396_s15 = scalar_lea.hbm %s539_s5, 256 }
 0x1d9   :  { %p397_p5 = scmp.ne.s32.totalorder %s539_s5, %s396_s15  ;;  %p400_p6 = scmp.lt.u32.totalorder %s396_s15, %s539_s5 }
 0x1db   :  { %p402_p7 = pnand %p400_p6, %p397_p5 }
 0x1dd   :  { %405 = shalt.err (!%p402_p7)
}
 0x1de   :  { %s410_s20 = smov 128   ;;  %s411_s21 = smov 8  }
 0x1df   :  { %257 = dma.vmem_to_hbm [thread:$0]  %s252_s12, 256, %s539_s5, [#allocation4], %s410_s20, %s410_s20, %s411_s21  }
 0x1e0   :  { %406 = dma.done.wait [#allocation4], 256  }
 0x1e1   :  { %407 = vsyncadd [#allocation4], 4294967040 }
 0x1e2   :  { %261 = vsyncpa [#allocation4], 1 }

</bundles_post_ra>
